<compile_context>
chip_gen: v7x
topology: tpu7x:2x2x1
jax: 0.10.0
libtpu: 0.0.40
codegen_flags: <defaults>
</compile_context>

<pallas_src>
import functools

import jax
import jax.numpy as jnp
from jax import lax
from jax.experimental import pallas as pl
from jax.experimental.pallas import tpu as pltpu

LANES = 128
SUBLANES = 8
MAX_BLOCK_ROWS = 4096                 # 4096*128*4B = 2 MiB per f32 stream block
VMEM_LIMIT_BYTES = 32 * 1024 * 1024   # == v7x scoped default; raises v5e's 16 MiB


def _bce_loss_f32(x, y, pos_weight):
    """PyTorch BCEWithLogitsLoss (numerically stable, with pos_weight), in f32."""
    x = x.astype(jnp.float32)
    y = y.astype(jnp.float32)
    log_w = 1.0 + (pos_weight - 1.0) * y
    return (1.0 - y) * x + log_w * (jnp.log1p(jnp.exp(-jnp.abs(x))) +
                                    jnp.maximum(-x, 0.0))


def _bce_reduce_kernel(x_ref, y_ref, o_ref, acc_ref, *, pos_weight, block_rows,
                       chunk_steps, last_block, mask_last, tail_elems,
                       has_phantom, scale):
    """Per-chunk sum of BCE loss into an (8,128) vector accumulator."""
    c = pl.program_id(0)          # chunk axis ("parallel": megacore on v7x)
    i = pl.program_id(1)          # step within chunk ("arbitrary")
    blk = c * chunk_steps + i     # global block index

    @pl.when(i == 0)
    def _():
        acc_ref[...] = jnp.zeros_like(acc_ref)

    def accumulate(masked):
        loss = _bce_loss_f32(x_ref[...], y_ref[...], pos_weight)
        if masked:
            # Final ragged block only: zero padded / OOB-garbage tail elements
            # (select, so NaN/Inf garbage from the row-padded read is safe).
            row = lax.broadcasted_iota(jnp.int32, (block_rows, LANES), 0)
            col = lax.broadcasted_iota(jnp.int32, (block_rows, LANES), 1)
            loss = jnp.where(row * LANES + col < tail_elems, loss, 0.0)
        # (block_rows,128) -> (block_rows//8, 8, 128) -> VPU-add into (8,128).
        acc_ref[...] += jnp.sum(
            loss.reshape(block_rows // SUBLANES, SUBLANES, LANES), axis=0)

    if mask_last:
        # Unmasked fast path for every full block; mask only the last block.
        @pl.when(blk < last_block)
        def _():
            accumulate(False)

        @pl.when(blk == last_block)
        def _():
            accumulate(True)
    elif has_phantom:
        # Skip the (clamped) phantom step entirely; all real blocks are full.
        @pl.when(blk <= last_block)
        def _():
            accumulate(False)
    else:
        accumulate(False)

    @pl.when(i == chunk_steps - 1)
    def _():
        val = acc_ref[...]
        if scale != 1.0:          # fold 1/n for 'mean' into the finalize step
            val = val * scale
        o_ref[0] = val


def _bce_elementwise_kernel(x_ref, y_ref, o_ref, *, pos_weight):
    """Elementwise BCE-with-logits loss (reduction='none'), stored in out dtype."""
    o_ref[...] = _bce_loss_f32(x_ref[...], y_ref[...],
                               pos_weight).astype(o_ref.dtype)


def _as_2d(a):
    """Flatten to (rows, 128) with rows % 8 == 0; pad (copy) only if needed."""
    flat = a.reshape(-1)
    n = flat.shape[0]
    pad = (-n) % (SUBLANES * LANES)
    if pad:
        # Full extra pass over this stream; only hit when n % 1024 != 0.
        flat = jnp.pad(flat, (0, pad))
    return flat.reshape(-1, LANES), n


@functools.partial(jax.jit,
                   static_argnames=("reduction", "pos_weight", "block_rows"))
def binary_loss(inputs, targets, *, reduction="mean", pos_weight=2.13,
                block_rows=None):
    """JAX/Pallas equivalent of BinaryLoss(reduction, pos_weight)."""
    if reduction not in ("none", "sum", "mean"):
        raise ValueError(f"unsupported reduction: {reduction}")
    orig_shape = inputs.shape
    orig_dtype = inputs.dtype
    pos_weight = float(pos_weight)

    x2d, n = _as_2d(inputs)       # original dtype: no wrapper-side upcast
    y2d, _ = _as_2d(targets)
    rows = x2d.shape[0]

    if block_rows is None:
        block_rows = MAX_BLOCK_ROWS
    block_rows = min(int(block_rows), rows)         # rows is a multiple of 8
    if block_rows % SUBLANES:
        raise ValueError("block_rows must be a multiple of 8")
    num_blocks = pl.cdiv(rows, block_rows)

    if reduction == "none":
        kern = functools.partial(_bce_elementwise_kernel, pos_weight=pos_weight)
        out = pl.pallas_call(
            kern,
            out_shape=jax.ShapeDtypeStruct((rows, LANES), orig_dtype),
            grid_spec=pltpu.PrefetchScalarGridSpec(
                num_scalar_prefetch=0,
                grid=(num_blocks,),
                in_specs=[pl.BlockSpec((block_rows, LANES), lambda i: (i, 0)),
                          pl.BlockSpec((block_rows, LANES), lambda i: (i, 0))],
                out_specs=pl.BlockSpec((block_rows, LANES), lambda i: (i, 0)),
            ),
            compiler_params=pltpu.CompilerParams(
                dimension_semantics=("parallel",),
                vmem_limit_bytes=VMEM_LIMIT_BYTES),
        )(x2d, y2d)
        out = out.reshape(-1)
        if out.shape[0] != n:
            out = out[:n]
        return out.reshape(orig_shape)

    # reduction in {"sum", "mean"}: chunked, vector-accumulated sum.
    if num_blocks >= 2 and num_blocks % 2 == 0:
        num_chunks = 2            # perfectly balanced megacore split (v7x)
    elif num_blocks >= 9:
        num_chunks = 2            # odd but large: 1-block imbalance is cheap
    else:
        num_chunks = 1            # tiny / odd grids: avoid phantom re-DMA
    chunk_steps = pl.cdiv(num_blocks, num_chunks)
    has_phantom = num_chunks * chunk_steps != num_blocks   # static

    last_block = num_blocks - 1
    mask_last = (num_blocks * block_rows * LANES) != n     # true raggedness
    tail_elems = n - last_block * block_rows * LANES       # static int
    scale = (1.0 / n) if reduction == "mean" else 1.0

    def in_map(c, i):
        # Phantom steps (odd num_blocks with 2 chunks) clamp onto the last
        # real block; their compute is skipped in-kernel via pl.when.
        return (jnp.minimum(c * chunk_steps + i, last_block), 0)

    kern = functools.partial(
        _bce_reduce_kernel, pos_weight=pos_weight, block_rows=block_rows,
        chunk_steps=chunk_steps, last_block=last_block, mask_last=mask_last,
        tail_elems=tail_elems, has_phantom=has_phantom, scale=scale)

    partials = pl.pallas_call(
        kern,
        out_shape=jax.ShapeDtypeStruct((num_chunks, SUBLANES, LANES),
                                       jnp.float32),
        grid_spec=pltpu.PrefetchScalarGridSpec(
            num_scalar_prefetch=0,
            grid=(num_chunks, chunk_steps),
            in_specs=[pl.BlockSpec((block_rows, LANES), in_map),
                      pl.BlockSpec((block_rows, LANES), in_map)],
            out_specs=pl.BlockSpec((1, SUBLANES, LANES),
                                   lambda c, i: (c, 0, 0)),
            scratch_shapes=[pltpu.VMEM((SUBLANES, LANES), jnp.float32)],
        ),
        compiler_params=pltpu.CompilerParams(
            dimension_semantics=("parallel", "arbitrary"),
            vmem_limit_bytes=VMEM_LIMIT_BYTES),
    )(x2d, y2d)

    # Tiny final combine of per-chunk (8,128) partials ('mean' already scaled).
    return jnp.sum(partials)


def _reference(inputs, targets, reduction="mean", pos_weight=2.13):
    loss = _bce_loss_f32(inputs, targets, float(pos_weight))
    if reduction == "none":
        return loss
    if reduction == "sum":
        return jnp.sum(loss)
    return jnp.mean(loss)


if __name__ == "__main__":
    key = jax.random.PRNGKey(0)
    ks = jax.random.split(key, 8)

    # 1) Spec-sized NCHW logits / binary targets (all three reductions).
    x = jax.random.normal(ks[0], (2, 4, 16, 16), dtype=jnp.float32)
    t = (jax.random.uniform(ks[1], (2, 4, 16, 16)) > 0.5).astype(jnp.float32)
    out_mean = jax.block_until_ready(binary_loss(x, t, reduction="mean"))
    out_sum = jax.block_until_ready(binary_loss(x, t, reduction="sum"))
    out_none = jax.block_until_ready(binary_loss(x, t, reduction="none"))
    assert jnp.allclose(out_mean, _reference(x, t, "mean"), rtol=1e-5, atol=1e-5)
    assert jnp.allclose(out_sum, _reference(x, t, "sum"), rtol=1e-5, atol=1e-4)
    assert jnp.allclose(out_none, _reference(x, t, "none"), rtol=1e-5, atol=1e-5)
    assert out_none.shape == x.shape and out_none.dtype == x.dtype

    # 2) Ragged element count (single block, in-kernel tail mask).
    xr = jax.random.normal(ks[2], (2, 3, 7, 9), dtype=jnp.float32)
    tr = (jax.random.uniform(ks[3], (2, 3, 7, 9)) > 0.5).astype(jnp.float32)
    for red in ("mean", "sum"):
        assert jnp.allclose(binary_loss(xr, tr, reduction=red),
                            _reference(xr, tr, red), rtol=1e-5, atol=1e-4)
    rn = jax.block_until_ready(binary_loss(xr, tr, reduction="none"))
    assert rn.shape == xr.shape
    assert jnp.allclose(rn, _reference(xr, tr, "none"), rtol=1e-5, atol=1e-5)

    # 3) Multi-block reduce paths (small block_rows override): even #blocks
    #    (balanced 2-chunk), odd #blocks >= 9 (phantom-step skip), small odd
    #    #blocks (single chunk) -- all with a ragged, masked last block.
    xm = jax.random.normal(ks[4], (2, 4, 44, 127), dtype=jnp.float32)
    tm = (jax.random.uniform(ks[5], (2, 4, 44, 127)) > 0.5).astype(jnp.float32)
    ref_s = _reference(xm, tm, "sum")
    for br in (16, 32, 72, 88):   # 352 rows -> 22 / 11 / 5 / 4 blocks
        got = binary_loss(xm, tm, reduction="sum", block_rows=br)
        assert jnp.allclose(got, ref_s, rtol=1e-4, atol=1e-2), (br, got, ref_s)
    assert jnp.allclose(binary_loss(xm, tm, reduction="mean", block_rows=40),
                        _reference(xm, tm, "mean"), rtol=1e-5, atol=1e-5)

    # 4) Multi-block 'none' path with a ragged last block (write-clipping).
    got_n = jax.block_until_ready(
        binary_loss(xm, tm, reduction="none", block_rows=64))  # 6 blocks
    assert got_n.shape == xm.shape and got_n.dtype == xm.dtype
    assert jnp.allclose(got_n, _reference(xm, tm, "none"), rtol=1e-5, atol=1e-5)

    # 5) bf16 logits / f32 targets on the default large-block path
    #    (in-kernel upcast; no wrapper-side dtype conversion).
    xb = jax.random.normal(ks[6], (2, 9, 128, 128), dtype=jnp.bfloat16)
    tb = (jax.random.uniform(ks[7], (2, 9, 128, 128)) > 0.5).astype(jnp.float32)
    got_sum = jax.block_until_ready(binary_loss(xb, tb, reduction="sum"))
    assert jnp.allclose(got_sum, _reference(xb, tb, "sum"), rtol=1e-4, atol=1e-2)
    assert jnp.allclose(binary_loss(xb, tb, reduction="mean"),
                        _reference(xb, tb, "mean"), rtol=1e-4, atol=1e-5)

    print("KERNEL_OK")
</pallas_src>

<mosaic_0001>
module attributes {stable_mosaic.version = 11 : i64} {
  func.func @_bce_reduce_kernel(%arg0: i32, %arg1: i32, %arg2: memref<16x128xf32, #tpu.memory_space<vmem>>, %arg3: memref<16x128xf32, #tpu.memory_space<vmem>>, %arg4: memref<1x8x128xf32, #tpu.memory_space<vmem>>, %arg5: memref<8x128xf32, #tpu.memory_space<vmem>>) attributes {dimension_semantics = [#tpu.dimension_semantics<parallel>, #tpu.dimension_semantics<arbitrary>], iteration_bounds = array<i64: 1, 1>, scalar_prefetch = 0 : i64, scratch_operands = 1 : i64, tpu.core_type = #tpu.core_type<tc>, window_params = [{transform_indices = @transform_0, window_bounds = array<i64: 16, 128>}, {transform_indices = @transform_1, window_bounds = array<i64: 16, 128>}, {transform_indices = @transform_2, window_bounds = array<i64: 1, 8, 128>}]} {
    %c0_i32 = arith.constant 0 : i32
    %0 = arith.cmpi eq, %arg1, %c0_i32 : i32
    %1 = arith.extui %0 : i1 to i32
    %c0_i32_0 = arith.constant 0 : i32
    %2 = arith.cmpi ne, %1, %c0_i32_0 : i32
    scf.if %2 {
      %cst_16 = arith.constant 0.000000e+00 : f32
      %32 = vector.broadcast %cst_16 : f32 to vector<8x128xf32>
      %c0_17 = arith.constant 0 : index
      %c0_18 = arith.constant 0 : index
      %33 = vector.load %arg5[%c0_17, %c0_18] : memref<8x128xf32, #tpu.memory_space<vmem>>, vector<8x128xf32>
      tpu.vector_store %arg5[%c0_17, %c0_18], %32 {strides = array<i32>} : memref<8x128xf32, #tpu.memory_space<vmem>>, vector<8x128xf32>,
    } else {
    }
    %c0 = arith.constant 0 : index
    %c0_1 = arith.constant 0 : index
    %3 = vector.load %arg2[%c0, %c0_1] : memref<16x128xf32, #tpu.memory_space<vmem>>, vector<16x128xf32>
    %c0_2 = arith.constant 0 : index
    %c0_3 = arith.constant 0 : index
    %4 = vector.load %arg3[%c0_2, %c0_3] : memref<16x128xf32, #tpu.memory_space<vmem>>, vector<16x128xf32>
    %cst = arith.constant 1.130000e+00 : f32
    %5 = vector.broadcast %cst : f32 to vector<16x128xf32>
    %6 = arith.mulf %5, %4 : vector<16x128xf32>
    %cst_4 = arith.constant 1.000000e+00 : f32
    %7 = vector.broadcast %cst_4 : f32 to vector<16x128xf32>
    %8 = arith.addf %7, %6 : vector<16x128xf32>
    %cst_5 = arith.constant 1.000000e+00 : f32
    %9 = vector.broadcast %cst_5 : f32 to vector<16x128xf32>
    %10 = arith.subf %9, %4 : vector<16x128xf32>
    %11 = arith.mulf %10, %3 : vector<16x128xf32>
    %12 = math.absf %3 : vector<16x128xf32>
    %cst_6 = arith.constant 0.000000e+00 : f32
    %13 = vector.broadcast %cst_6 : f32 to vector<16x128xf32>
    %14 = arith.subf %13, %12 : vector<16x128xf32>
    %15 = math.exp %14 : vector<16x128xf32>
    %16 = math.log1p %15 : vector<16x128xf32>
    %cst_7 = arith.constant 0.000000e+00 : f32
    %17 = vector.broadcast %cst_7 : f32 to vector<16x128xf32>
    %18 = arith.subf %17, %3 : vector<16x128xf32>
    %cst_8 = arith.constant 0.000000e+00 : f32
    %19 = vector.broadcast %cst_8 : f32 to vector<16x128xf32>
    %20 = arith.maximumf %18, %19 : vector<16x128xf32>
    %21 = arith.addf %16, %20 : vector<16x128xf32>
    %22 = arith.mulf %8, %21 : vector<16x128xf32>
    %23 = arith.addf %11, %22 : vector<16x128xf32>
    %c0_9 = arith.constant 0 : index
    %c0_10 = arith.constant 0 : index
    %24 = vector.load %arg5[%c0_9, %c0_10] : memref<8x128xf32, #tpu.memory_space<vmem>>, vector<8x128xf32>
    %25 = vector.shape_cast %23 : vector<16x128xf32> to vector<2x8x128xf32>
    %cst_11 = arith.constant dense<0.000000e+00> : vector<8x128xf32>
    %26 = vector.multi_reduction <add>, %25, %cst_11 [0] : vector<2x8x128xf32> to vector<8x128xf32>
    %27 = arith.addf %24, %26 : vector<8x128xf32>
    %c0_12 = arith.constant 0 : index
    %c0_13 = arith.constant 0 : index
    %28 = vector.load %arg5[%c0_12, %c0_13] : memref<8x128xf32, #tpu.memory_space<vmem>>, vector<8x128xf32>
    tpu.vector_store %arg5[%c0_12, %c0_13], %27 {strides = array<i32>} : memref<8x128xf32, #tpu.memory_space<vmem>>, vector<8x128xf32>,
    %c0_i32_14 = arith.constant 0 : i32
    %29 = arith.cmpi eq, %arg1, %c0_i32_14 : i32
    %30 = arith.extui %29 : i1 to i32
    %c0_i32_15 = arith.constant 0 : i32
    %31 = arith.cmpi ne, %30, %c0_i32_15 : i32
    scf.if %31 {
      %c0_16 = arith.constant 0 : index
      %c0_17 = arith.constant 0 : index
      %32 = vector.load %arg5[%c0_16, %c0_17] : memref<8x128xf32, #tpu.memory_space<vmem>>, vector<8x128xf32>
      %cst_18 = arith.constant 4.8828125E-4 : f32
      %33 = vector.broadcast %cst_18 : f32 to vector<8x128xf32>
      %34 = arith.mulf %32, %33 : vector<8x128xf32>
      %c0_19 = arith.constant 0 : index
      %c0_20 = arith.constant 0 : index
      %c0_21 = arith.constant 0 : index
      %35 = vector.load %arg4[%c0_19, %c0_20, %c0_21] : memref<1x8x128xf32, #tpu.memory_space<vmem>>, vector<1x8x128xf32>
      %36 = vector.shape_cast %35 : vector<1x8x128xf32> to vector<8x128xf32>
      %37 = vector.shape_cast %34 : vector<8x128xf32> to vector<1x8x128xf32>
      tpu.vector_store %arg4[%c0_19, %c0_20, %c0_21], %37 {strides = array<i32>} : memref<1x8x128xf32, #tpu.memory_space<vmem>>, vector<1x8x128xf32>,
    } else {
    }
    return
  }
  func.func @transform_0(%arg0: i32, %arg1: i32) -> (i32, i32) {
    %c1_i32 = arith.constant 1 : i32
    %0 = arith.muli %arg0, %c1_i32 : i32
    %1 = arith.addi %0, %arg1 : i32
    %c0_i32 = arith.constant 0 : i32
    %2 = arith.minsi %1, %c0_i32 : i32
    %c0_i32_0 = arith.constant 0 : i32
    %c0_i32_1 = arith.constant 0 : i32
    return %2, %c0_i32_0 : i32, i32
  }
  func.func @transform_1(%arg0: i32, %arg1: i32) -> (i32, i32) {
    %c1_i32 = arith.constant 1 : i32
    %0 = arith.muli %arg0, %c1_i32 : i32
    %1 = arith.addi %0, %arg1 : i32
    %c0_i32 = arith.constant 0 : i32
    %2 = arith.minsi %1, %c0_i32 : i32
    %c0_i32_0 = arith.constant 0 : i32
    %c0_i32_1 = arith.constant 0 : i32
    return %2, %c0_i32_0 : i32, i32
  }
  func.func @transform_2(%arg0: i32, %arg1: i32) -> (i32, i32, i32) {
    %c0_i32 = arith.constant 0 : i32
    %c0_i32_0 = arith.constant 0 : i32
    %c0_i32_1 = arith.constant 0 : i32
    return %arg0, %c0_i32, %c0_i32_0 : i32, i32, i32
  }
}

</mosaic_0001>

<bundles_post_ra>
// kernel: binary_loss.1
= control target key start
LH: loop header
LB: loop body
LE: loop exit
PB: predicated region body
PF: predicated region fallthrough
CT: control target
= control target key end

     0   :  { %s192_s0 = inlined_call_operand.vmem [shape: f32[16,128], index: 0, kind: input, shape index: {}]   ;;  %s193_s1 = inlined_call_operand.vmem [shape: f32[16,128], index: 1, kind: input, shape index: {}]   ;;  %s194_s2 = inlined_call_operand.vmem [shape: f32[1,8,128], index: 2, kind: output, shape index: {}]  }
   0x1   :  { %v80_v0 = vld [vmem:[%s192_s0] sm:$0xff]  ;;  %v81_v1 = vld [vmem:[%s192_s0 + $0x8] sm:$0xff] }
   0x2   :  { %v92_v2 = vand.u32 2147483647, %v80_v0  ;;  %v93_v3 = vand.u32 2147483647, %v81_v1  ;;  %v82_v14 = vld [vmem:[%s193_s1] sm:$0xff]  ;;  %v83_v16 = vld [vmem:[%s193_s1 + $0x8] sm:$0xff] }
   0x3   :  { %v118_v19 = vsub.f32 0.0, %v80_v0  ;;  %v119_v21 = vsub.f32 0.0, %v81_v1  ;;  %v84_v22 = vmul.f32 1.13, %v82_v14  ;;  %v85_v23 = vmul.f32 1.13, %v83_v16 }
   0x4   :  { %v94_v4 = vsub.f32 0.0, %v92_v2  ;;  %v95_v5 = vsub.f32 0.0, %v93_v3  ;;  %v88_v26 = vsub.f32 1.0, %v82_v14  ;;  %v89_v30 = vsub.f32 1.0, %v83_v16 }
   0x5   :  { %v120_v28 = vmax.f32 %v118_v19, 0.0  ;;  %v121_v32 = vmax.f32 %v119_v21, 0.0  ;;  %v86_v33 = vadd.f32 1.0, %v84_v22  ;;  %v87_v35 = vadd.f32 1.0, %v85_v23 }
   0x6   :  { %v96_v6 = vmul.f32 1.442695, %v94_v4  ;;  %v98_v7 = vmul.f32 1.442695, %v95_v5  ;;  %v90_v37 = vmul.f32 %v88_v26, %v80_v0  ;;  %v91_v40 = vmul.f32 %v89_v30, %v81_v1 }
   0x8   :  { %154 = vpow2.f32 %v96_v6 }
   0x9   :  { %156 = vpow2.f32 %v98_v7 }
  0x12   :  { %v155_v8 = vpop.eup %154 }
  0x13   :  { %v157_v9 = vpop.eup %156  ;;  %v100_v10 = vadd.f32 1.0, %v155_v8  ;;  %v103_v12 = vmul.f32 -0.5, %v155_v8  ;;  %v106_v17 = vand.u32 2147483647, %v155_v8 }
  0x14   :  { %v109_v11 = vadd.f32 1.0, %v157_v9  ;;  %v112_v13 = vmul.f32 -0.5, %v157_v9  ;;  %v115_v20 = vand.u32 2147483647, %v157_v9 }
  0x15   :  { %158 = vlog2.f32 %v100_v10  ;;  %v104_v15 = vadd.f32 1.0, %v103_v12  ;;  %vm107_vm0 = vcmp.lt.f32.partialorder %v106_v17, 0.0004427343 }
  0x16   :  { %160 = vlog2.f32 %v109_v11  ;;  %v113_v18 = vadd.f32 1.0, %v112_v13  ;;  %vm116_vm1 = vcmp.lt.f32.partialorder %v115_v20, 0.0004427343 }
  0x17   :  { %v105_v24 = vmul.f32 %v155_v8, %v104_v15 }
  0x18   :  { %v114_v27 = vmul.f32 %v157_v9, %v113_v18 }
  0x1f   :  { %v159_v25 = vpop.eup %158 }
  0x20   :  { %v161_v29 = vpop.eup %160  ;;  %v102_v31 = vmul.f32 0.6931472, %v159_v25 }
  0x21   :  { %v111_v34 = vmul.f32 0.6931472, %v161_v29 }
  0x22   :  { %v108_v36 = vsel %vm107_vm0, %v105_v24, %v102_v31 }
  0x23   :  { %v117_v38 = vsel %vm116_vm1, %v114_v27, %v111_v34  ;;  %v122_v39 = vadd.f32 %v120_v28, %v108_v36 }
  0x24   :  { %v123_v41 = vadd.f32 %v121_v32, %v117_v38 }
  0x25   :  { %v124_v42 = vmul.f32 %v122_v39, %v86_v33 }
  0x26   :  { %v125_v43 = vmul.f32 %v123_v41, %v87_v35 }
  0x27   :  { %v126_v44 = vadd.f32 %v124_v42, %v90_v37 }
  0x28   :  { %v127_v45 = vadd.f32 %v125_v43, %v91_v40 }
  0x2a   :  { %v129_v46 = vadd.f32 %v127_v45, %v126_v44 }
  0x2c   :  { %v136_v47 = vmul.f32 0.00048828125, %v129_v46 }
  0x2e   :  { %137 = vst [vmem:[%s194_s2] sm:$0xff] %v136_v47 }

</bundles_post_ra>
